<compile_context>
chip_gen: v7x
topology: tpu7x:2x2x1
jax: 0.10.0
libtpu: 0.0.40
codegen_flags: <defaults>
</compile_context>

<pallas_src>
import math
from functools import partial

import jax
import jax.numpy as jnp
from jax.experimental import pallas as pl
from jax.experimental.pallas import tpu as pltpu

HIDDEN = 256  # stands in for 4096 (must stay a multiple of 128)


def gptj_attn_kernel(x_ref, w_ref, out_ref, q_acc, q_bf16, *, tk):
    """grid = (row_tiles, 2, H // tk).

    axis 1 (j): 0 -> q = x @ Wq^T   (K-accumulated into q_acc, f32)
                1 -> z = q @ Wo^T   (K-accumulated directly into out_ref, f32)
    axis 2 (k): reduction tiles of size tk over the hidden dim.
    x_ref is the resident (tm, H) bf16 row tile; w_ref is the streamed (tk, H)
    bf16 tile of the stacked weight [Wq^T; Wo^T].
    """
    j = pl.program_id(1)
    k = pl.program_id(2)
    start = pl.multiple_of(k * tk, tk)

    @pl.when(jnp.logical_and(j == 0, k == 0))
    def _():
        q_acc[...] = jnp.zeros_like(q_acc)

    @pl.when(j == 0)
    def _():
        xk = x_ref[:, pl.ds(start, tk)]  # already bf16
        q_acc[...] += jnp.dot(xk, w_ref[...], preferred_element_type=jnp.float32)

    @pl.when(jnp.logical_and(j == 1, k == 0))
    def _():
        # Cast the fully-accumulated q to bf16 once; zero the output accumulator.
        q_bf16[...] = q_acc[...].astype(jnp.bfloat16)
        out_ref[...] = jnp.zeros_like(out_ref)

    @pl.when(j == 1)
    def _():
        qk = q_bf16[:, pl.ds(start, tk)]
        out_ref[...] += jnp.dot(qk, w_ref[...], preferred_element_type=jnp.float32)


def _select_config():
    """Per-generation (tm, tk, vmem_limit_bytes) defaults."""
    try:
        vmem_bytes = pltpu.get_tpu_info().vmem_capacity_bytes
    except Exception:
        vmem_bytes = 128 * 1024 * 1024
    if vmem_bytes <= 64 * 1024 * 1024:
        # v7x: 64 MiB physical VMEM per TensorCore -> stay well under it.
        # tk=1024 -> (tk, H) bf16 weight tile = 8 MiB, double-buffered = 16 MiB.
        return 256, 1024, 48 * 1024 * 1024
    # v5e / v6e: 128 MiB VMEM -> bigger weight tiles amortize per-step overhead.
    return 256, 2048, 100 * 1024 * 1024


def stack_gptj_weights(wq_t, wo_t):
    """Precompute ONCE at model-load time: stacked bf16 [Wq^T; Wo^T], shape (2H, H).

    Rows [0, H) = q_proj.weight^T, rows [H, 2H) = out_proj.weight^T.
    Keeping this out of the per-call path avoids re-materializing a 64 MiB HBM
    copy of the weights before every kernel invocation at the real H=4096.
    """
    return jnp.concatenate([wq_t, wo_t], axis=0).astype(jnp.bfloat16)


def gptj_attention(x2d, w_stack, *, tm=None, tk=None, vmem_limit_bytes=None):
    """x2d: (tokens, H) f32.  w_stack: (2H, H) bf16 from stack_gptj_weights."""
    M, H = x2d.shape
    assert w_stack.shape == (2 * H, H), "expected stacked [Wq^T; Wo^T] weight"
    assert H % 128 == 0, "hidden dim must be lane-aligned (multiple of 128)"

    cfg_tm, cfg_tk, cfg_limit = _select_config()
    tm = tm if tm is not None else cfg_tm
    tk = tk if tk is not None else cfg_tk
    vmem_limit_bytes = vmem_limit_bytes if vmem_limit_bytes is not None else cfg_limit

    tk = min(tk, H)
    assert H % tk == 0 and tk % 128 == 0
    kpb = H // tk  # K-tiles per matmul

    # Pre-cast x to bf16 (MXU input dtype) and pad the token dim up to tm.
    Mp = pl.cdiv(M, tm) * tm
    x_bf16 = x2d.astype(jnp.bfloat16)
    if Mp != M:
        x_bf16 = jnp.pad(x_bf16, ((0, Mp - M), (0, 0)))
    w_stack = w_stack.astype(jnp.bfloat16)

    out = pl.pallas_call(
        partial(gptj_attn_kernel, tk=tk),
        # f32 output: it doubles as the z accumulator inside the kernel.
        out_shape=jax.ShapeDtypeStruct((Mp, H), jnp.float32),
        grid_spec=pltpu.PrefetchScalarGridSpec(
            num_scalar_prefetch=0,
            grid=(Mp // tm, 2, kpb),
            in_specs=[
                # x row tile: block index depends only on i -> VMEM-resident
                # across the (j, k) reduction steps (no re-DMA).
                pl.BlockSpec((tm, H), lambda i, j, k: (i, 0)),
                # streamed bf16 weight K-tile (index changes every step ->
                # double-buffered DMA overlapped with the MXU).
                pl.BlockSpec((tk, H), lambda i, j, k: (j * kpb + k, 0)),
            ],
            # Output block index depends only on i -> resident across j, k;
            # used directly as the f32 z accumulator.
            out_specs=pl.BlockSpec((tm, H), lambda i, j, k: (i, 0)),
            scratch_shapes=[
                pltpu.VMEM((tm, H), jnp.float32),   # q f32 accumulator
                pltpu.VMEM((tm, H), jnp.bfloat16),  # q cast once for matmul 2
            ],
        ),
        compiler_params=pltpu.CompilerParams(
            dimension_semantics=("parallel", "arbitrary", "arbitrary"),
            vmem_limit_bytes=vmem_limit_bytes,
        ),
    )(x_bf16, w_stack)
    return out[:M]


def gptj_attention_reference(x2d, wq_t, wo_t):
    # Same arithmetic as the kernel: bf16 at the MXU inputs, f32 accumulation,
    # q cast to bf16 before the second matmul.
    q = jnp.dot(x2d.astype(jnp.bfloat16), wq_t.astype(jnp.bfloat16),
                preferred_element_type=jnp.float32)
    z = jnp.dot(q.astype(jnp.bfloat16), wo_t.astype(jnp.bfloat16),
                preferred_element_type=jnp.float32)
    return z


if __name__ == "__main__":
    key = jax.random.PRNGKey(0)
    kx, kq, ko = jax.random.split(key, 3)

    batch, seq = 2, 8
    x = jax.random.normal(kx, (batch, seq, HIDDEN), jnp.float32)

    # PyTorch nn.Linear(H, H, bias=False) default init: U(-1/sqrt(H), 1/sqrt(H)),
    # stored pre-transposed as (in, out) so y = x @ W.
    bound = 1.0 / math.sqrt(HIDDEN)
    wq_t = jax.random.uniform(kq, (HIDDEN, HIDDEN), jnp.float32, -bound, bound)
    wo_t = jax.random.uniform(ko, (HIDDEN, HIDDEN), jnp.float32, -bound, bound)

    # Load-time precompute of the stacked bf16 weight (hoisted off the hot path).
    w_stack = stack_gptj_weights(wq_t, wo_t)
    jax.block_until_ready(w_stack)

    x2d = x.reshape(batch * seq, HIDDEN)  # (tokens, hidden)

    # tm=128 / tk=128 so the K-reduction loop (2 steps per matmul) is actually
    # exercised at H=256; at the real H=4096 the per-generation auto-config
    # (tm=256, tk=1024 on v7x / tk=2048 on v5e/v6e) is used instead.
    out2d = gptj_attention(x2d, w_stack, tm=128, tk=128)
    out = out2d.reshape(batch, seq, HIDDEN)
    jax.block_until_ready(out)

    ref = gptj_attention_reference(x2d, wq_t, wo_t).reshape(batch, seq, HIDDEN)

    assert out.shape == (batch, seq, HIDDEN)
    err = jnp.max(jnp.abs(out - ref))
    assert err < 1e-2, f"Pallas kernel mismatch vs reference: max abs err {err}"

    print("KERNEL_OK")
</pallas_src>

<mosaic_0001>
module attributes {stable_mosaic.version = 11 : i64} {
  func.func @gptj_attn_kernel(%arg0: i32, %arg1: i32, %arg2: i32, %arg3: memref<128x256xbf16, #tpu.memory_space<vmem>>, %arg4: memref<128x256xbf16, #tpu.memory_space<vmem>>, %arg5: memref<128x256xf32, #tpu.memory_space<vmem>>, %arg6: memref<128x256xf32, #tpu.memory_space<vmem>>, %arg7: memref<128x256xbf16, #tpu.memory_space<vmem>>) attributes {dimension_semantics = [#tpu.dimension_semantics<parallel>, #tpu.dimension_semantics<arbitrary>, #tpu.dimension_semantics<arbitrary>], iteration_bounds = array<i64: 1, 2, 2>, scalar_prefetch = 0 : i64, scratch_operands = 2 : i64, tpu.core_type = #tpu.core_type<tc>, window_params = [{transform_indices = @transform_0, window_bounds = array<i64: 128, 256>}, {transform_indices = @transform_1, window_bounds = array<i64: 128, 256>}, {transform_indices = @transform_2, window_bounds = array<i64: 128, 256>}]} {
    %c128_i32 = arith.constant 128 : i32
    %0 = arith.muli %arg2, %c128_i32 : i32
    %1 = tpu.assume_multiple %0, 128 : i32
    %c0_i32 = arith.constant 0 : i32
    %2 = arith.cmpi eq, %arg1, %c0_i32 : i32
    %c0_i32_0 = arith.constant 0 : i32
    %3 = arith.cmpi eq, %arg2, %c0_i32_0 : i32
    %4 = arith.andi %2, %3 : i1
    %5 = arith.extui %4 : i1 to i32
    %c0_i32_1 = arith.constant 0 : i32
    %6 = arith.cmpi ne, %5, %c0_i32_1 : i32
    scf.if %6 {
      %cst = arith.constant 0.000000e+00 : f32
      %18 = vector.broadcast %cst : f32 to vector<128x256xf32>
      %c0 = arith.constant 0 : index
      %c0_8 = arith.constant 0 : index
      %19 = vector.load %arg6[%c0, %c0_8] : memref<128x256xf32, #tpu.memory_space<vmem>>, vector<128x256xf32>
      tpu.vector_store %arg6[%c0, %c0_8], %18 {strides = array<i32>} : memref<128x256xf32, #tpu.memory_space<vmem>>, vector<128x256xf32>,
    } else {
    }
    %c0_i32_2 = arith.constant 0 : i32
    %7 = arith.cmpi eq, %arg1, %c0_i32_2 : i32
    %8 = arith.extui %7 : i1 to i32
    %c0_i32_3 = arith.constant 0 : i32
    %9 = arith.cmpi ne, %8, %c0_i32_3 : i32
    scf.if %9 {
      %c0 = arith.constant 0 : index
      %18 = arith.index_cast %1 : i32 to index
      %19 = vector.load %arg3[%c0, %18] : memref<128x256xbf16, #tpu.memory_space<vmem>>, vector<128x128xbf16>
      %c0_8 = arith.constant 0 : index
      %c0_9 = arith.constant 0 : index
      %20 = vector.load %arg6[%c0_8, %c0_9] : memref<128x256xf32, #tpu.memory_space<vmem>>, vector<128x256xf32>
      %c0_10 = arith.constant 0 : index
      %c0_11 = arith.constant 0 : index
      %21 = vector.load %arg4[%c0_10, %c0_11] : memref<128x256xbf16, #tpu.memory_space<vmem>>, vector<128x256xbf16>
      %cst = arith.constant dense<0.000000e+00> : vector<128x256xf32>
      %22 = tpu.matmul %19, %21, %cst {dimension_numbers = #tpu.dot_dimension_numbers<[1], [0], [0], [1], [0, 0, 1, 1], [], []>} : vector<128x128xbf16>, vector<128x256xbf16>, vector<128x256xf32> -> vector<128x256xf32>
      %23 = arith.addf %20, %22 : vector<128x256xf32>
      %c0_12 = arith.constant 0 : index
      %c0_13 = arith.constant 0 : index
      %24 = vector.load %arg6[%c0_12, %c0_13] : memref<128x256xf32, #tpu.memory_space<vmem>>, vector<128x256xf32>
      tpu.vector_store %arg6[%c0_12, %c0_13], %23 {strides = array<i32>} : memref<128x256xf32, #tpu.memory_space<vmem>>, vector<128x256xf32>,
    } else {
    }
    %c1_i32 = arith.constant 1 : i32
    %10 = arith.cmpi eq, %arg1, %c1_i32 : i32
    %c0_i32_4 = arith.constant 0 : i32
    %11 = arith.cmpi eq, %arg2, %c0_i32_4 : i32
    %12 = arith.andi %10, %11 : i1
    %13 = arith.extui %12 : i1 to i32
    %c0_i32_5 = arith.constant 0 : i32
    %14 = arith.cmpi ne, %13, %c0_i32_5 : i32
    scf.if %14 {
      %c0 = arith.constant 0 : index
      %c0_8 = arith.constant 0 : index
      %18 = vector.load %arg6[%c0, %c0_8] : memref<128x256xf32, #tpu.memory_space<vmem>>, vector<128x256xf32>
      %19 = arith.truncf %18 : vector<128x256xf32> to vector<128x256xbf16>
      %c0_9 = arith.constant 0 : index
      %c0_10 = arith.constant 0 : index
      %20 = vector.load %arg7[%c0_9, %c0_10] : memref<128x256xbf16, #tpu.memory_space<vmem>>, vector<128x256xbf16>
      tpu.vector_store %arg7[%c0_9, %c0_10], %19 {strides = array<i32>} : memref<128x256xbf16, #tpu.memory_space<vmem>>, vector<128x256xbf16>,
      %cst = arith.constant 0.000000e+00 : f32
      %21 = vector.broadcast %cst : f32 to vector<128x256xf32>
      %c0_11 = arith.constant 0 : index
      %c0_12 = arith.constant 0 : index
      %22 = vector.load %arg5[%c0_11, %c0_12] : memref<128x256xf32, #tpu.memory_space<vmem>>, vector<128x256xf32>
      tpu.vector_store %arg5[%c0_11, %c0_12], %21 {strides = array<i32>} : memref<128x256xf32, #tpu.memory_space<vmem>>, vector<128x256xf32>,
    } else {
    }
    %c1_i32_6 = arith.constant 1 : i32
    %15 = arith.cmpi eq, %arg1, %c1_i32_6 : i32
    %16 = arith.extui %15 : i1 to i32
    %c0_i32_7 = arith.constant 0 : i32
    %17 = arith.cmpi ne, %16, %c0_i32_7 : i32
    scf.if %17 {
      %c0 = arith.constant 0 : index
      %18 = arith.index_cast %1 : i32 to index
      %19 = vector.load %arg7[%c0, %18] : memref<128x256xbf16, #tpu.memory_space<vmem>>, vector<128x128xbf16>
      %c0_8 = arith.constant 0 : index
      %c0_9 = arith.constant 0 : index
      %20 = vector.load %arg5[%c0_8, %c0_9] : memref<128x256xf32, #tpu.memory_space<vmem>>, vector<128x256xf32>
      %c0_10 = arith.constant 0 : index
      %c0_11 = arith.constant 0 : index
      %21 = vector.load %arg4[%c0_10, %c0_11] : memref<128x256xbf16, #tpu.memory_space<vmem>>, vector<128x256xbf16>
      %cst = arith.constant dense<0.000000e+00> : vector<128x256xf32>
      %22 = tpu.matmul %19, %21, %cst {dimension_numbers = #tpu.dot_dimension_numbers<[1], [0], [0], [1], [0, 0, 1, 1], [], []>} : vector<128x128xbf16>, vector<128x256xbf16>, vector<128x256xf32> -> vector<128x256xf32>
      %23 = arith.addf %20, %22 : vector<128x256xf32>
      %c0_12 = arith.constant 0 : index
      %c0_13 = arith.constant 0 : index
      %24 = vector.load %arg5[%c0_12, %c0_13] : memref<128x256xf32, #tpu.memory_space<vmem>>, vector<128x256xf32>
      tpu.vector_store %arg5[%c0_12, %c0_13], %23 {strides = array<i32>} : memref<128x256xf32, #tpu.memory_space<vmem>>, vector<128x256xf32>,
    } else {
    }
    return
  }
  func.func @transform_0(%arg0: i32, %arg1: i32, %arg2: i32) -> (i32, i32) {
    %c0_i32 = arith.constant 0 : i32
    %c0_i32_0 = arith.constant 0 : i32
    return %arg0, %c0_i32 : i32, i32
  }
  func.func @transform_1(%arg0: i32, %arg1: i32, %arg2: i32) -> (i32, i32) {
    %c2_i32 = arith.constant 2 : i32
    %0 = arith.muli %arg1, %c2_i32 : i32
    %1 = arith.addi %0, %arg2 : i32
    %c0_i32 = arith.constant 0 : i32
    %c0_i32_0 = arith.constant 0 : i32
    return %1, %c0_i32 : i32, i32
  }
  func.func @transform_2(%arg0: i32, %arg1: i32, %arg2: i32) -> (i32, i32) {
    %c0_i32 = arith.constant 0 : i32
    %c0_i32_0 = arith.constant 0 : i32
    return %arg0, %c0_i32 : i32, i32
  }
}

</mosaic_0001>

<bundles_post_ra>
// kernel: tpu_custom_call.1
= control target key start
LH: loop header
LB: loop body
LE: loop exit
PB: predicated region body
PF: predicated region fallthrough
CT: control target
= control target key end

     0   :  { %7 = vsyncpa [#allocation5], 0  ;;  %s1869_s0 = inlined_call_operand.hbm [shape: bf16[128,256], index: 0, kind: input, shape index: {}]   ;;  %s1870_s1 = inlined_call_operand.hbm [shape: bf16[512,256], index: 1, kind: input, shape index: {}]   ;;  %s1871_s2 = inlined_call_operand.hbm [shape: f32[128,256], index: 2, kind: output, shape index: {}]  }
   0x1   :  { %8 = vsyncpa [#allocation8], 0 }
   0x2   :  { %10 = vsyncpa [#allocation8 + $0x1], 0 }
   0x3   :  { %11 = vsyncpa [#allocation6], 0  ;;  %s1583_s9 = smov 0   ;;  %s1585_s10 = smov 0  }
   0x4   :  { %s1587_s11 = smov 0   ;;  %s1589_s12 = smov 0  }
   0x5   :  { %s1591_s13 = smov 0   ;;  %s1593_s14 = smov 0  }
   0x6   :  { %s1595_s15 = smov 0   ;;  %s1597_s16 = smov 0  }
   0x7 LB: > { %s1876_s17 = sadd.s32 4294967295, %s1555_s16   ;;  %p86_p0 = scmp.ne.s32.totalorder %s1531_s10, %s1527_s9  ;;  %s1555_s16 = sphi %s1597_s16, %s17_s16   ;;  %s1551_s15 = sphi %s1595_s15, %s1894_s15   ;;  %s1547_s14 = sphi %s1593_s14, %s1893_s14   ;;  %s1543_s13 = sphi %s1591_s13, %s1892_s13   ;;  %s1539_s12 = sphi %s1589_s12, %s1891_s12   ;;  %s1535_s11 = sphi %s1587_s11, %s1890_s11   ;;  %s1531_s10 = sphi %s1585_s10, %s1889_s10   ;;  %s1527_s9 = sphi %s1583_s9, %s1888_s9  }
   0x8   : > { %p1625_p1 = scmp.eq.s32.totalorder %s1876_s17, 0  ;;  %p1150_p2 = scmp.ge.s32.totalorder %s1555_s16, 1 }
   0x9   : > { %p123_p3 = scmp.lt.s32.totalorder %s1555_s16, 5  ;;  %s1557_s21 = smov [#allocation4]  }
   0xa   : > { %s1877_s18 = scalar_select %p1625_p1, 1, 0 }
   0xb   : > { %p1633_p4 = por %p1625_p1, %p86_p0  ;;  %p1637_p5 = pnand %p1150_p2, %p123_p3 }
   0xc   : > { %s139_s22 = sshll.u32 %s1557_s21, 4  ;;  %s1397_s26 = scalar_lea.hbm %s1869_s0, 2048  ;;  %s140_s22 = int_to_ptr.vmem [resolvable:$true] %s139_s22 }
   0xd   : > { %s1878_s19 = scalar_select %p1633_p4, 1, 0 }
   0xe   : > { %s1879_s20 = scalar_select %p1637_p5, 1, 0 }
   0xf   : > { %p1254_p6 = pneg %p1637_p5  ;;  %p1398_p8 = scmp.ne.s32.totalorder %s1869_s0, %s1397_s26 }
  0x10   : > { %p1404_p12 = scmp.lt.u32.totalorder %s1397_s26, %s1869_s0 }
  0x11   : > { %p1645_p7 = pnand %p1254_p6, %p1625_p1 }
  0x13   : > { %p1399_p9 = pneg %p1645_p7 }
  0x15   : > { %p1400_p10 = pnand %p1399_p9, %p1398_p8 }
  0x17   : > { %p1401_p11 = pneg %p1400_p10 }
  0x19   : > { %p1406_p13 = pnand %p1404_p12, %p1401_p11 }
  0x1b   : > { %1409 = shalt.err (!%p1406_p13)
}
  0x1c   : > { %s1410_s3 = scalar_lea.vmem %s140_s22, 2048  ;;  %p1418_p6 = scmp.lt.s32.totalorder %s140_s22, %s140_s22 }
  0x1d   : > { %p1411_p0 = scmp.ne.s32.totalorder %s140_s22, %s1410_s3  ;;  %p1419_p4 = scmp.lt.s32.totalorder %s1410_s3, %s1410_s3 }
  0x1f   : > { %p1413_p2 = pnand %p1411_p0, %p1399_p9  ;;  %p1420_p1 = por %p1419_p4, %p1418_p6 }
  0x21   : > { %p1414_p3 = pneg %p1413_p2 }
  0x23   : > { %p1421_p5 = pnand %p1420_p1, %p1414_p3 }
  0x25   : > { %1424 = shalt.err (!%p1421_p5)
}
  0x26   : > { %s1558_s4 = smov 128   ;;  %s1559_s5 = smov 8  }
  0x27   : > { %1257 = dma.hbm_to_vmem [thread:$0]  (!%p1645_p7), %s1869_s0, 2048, %s140_s22, [#allocation5], %s1558_s4, %s1558_s4, %s1559_s5  }
  0x28   : > { %s29_s8 = sadd.s32 1, %s1547_s14  ;;  %s32_s9 = sadd.s32 1, %s1551_s15 }
  0x29   : > { %p30_p1 = scmp.ge.s32.totalorder %s29_s8, 2  ;;  %s1148_s21 = sshll.u32 %s1551_s15, 1 }
  0x2a   : > { %s73_s24 = sadd.s32 1, %s1535_s11  ;;  %s67_s25 = sadd.s32 %s1547_s14, %s1148_s21 }
  0x2b   : > { %s1896_s8 = smov (%p30_p1, %s29_s8), 0  ;;  %s1898_s9 = smov (!%p30_p1, %s32_s9), %s1551_s15 }
  0x2c   : > { %p80_p4 = scmp.ne.s32.totalorder %s1535_s11, %s1531_s10  ;;  %p34_p5 = scmp.ge.s32.totalorder %s1898_s9, 2 }
  0x2d   : > { %p81_p8 = scmp.eq.s32.totalorder %s1555_s16, 0  ;;  %p1263_p9 = scmp.lt.s32.totalorder %s1555_s16, 4 }
  0x2e   : > { %s153_s23 = sand.u32 1, %s1535_s11   ;;  %s1900_s9 = smov (%p34_p5, %s1898_s9), 0 }
  0x2f   : > { %p82_p7 = por %p81_p8, %p80_p4  ;;  %s1149_s22 = sshll.u32 %s1900_s9, 1 }
  0x30   : > { %s1153_s26 = sshll.u32 %s153_s23, 7  ;;  %s69_s27 = sadd.s32 %s1149_s22, %s1896_s8 }
  0x31   : > { %s70_s28 = ssub.s32 %s67_s25, %s69_s27  ;;  %s1211_s29 = sshll.u32 %s67_s25, 11 }
  0x32   : > { %p71_p10 = scmp.eq.s32.totalorder %s70_s28, 0  ;;  %s1688_s6 = scalar_lea.hbm %s1870_s1, %s1211_s29 }
  0x33   : > { %s157_s7 = scalar_lea.vmem [#allocation7], %s1153_s26  ;;  %p1692_p11 = pnand %p1263_p9, %p82_p7 }
  0x34   : > { %s167_s21 = sshll.u32 %s157_s7, 4  ;;  %s1701_s22 = scalar_lea.sflag [#allocation8], %s153_s23  ;;  %s1699_s21 = int_to_ptr.vmem [resolvable:$true] %s167_s21 }
  0x35   : > { %s1697_s25 = scalar_select %p71_p10, %s1535_s11, %s73_s24  }
  0x36   : > { %s1425_s27 = scalar_lea.hbm %s1688_s6, 2048  ;;  %p1427_p13 = pneg %p1692_p11 }
  0x37   : > { %p1426_p12 = scmp.ne.s32.totalorder %s1688_s6, %s1425_s27  ;;  %s1430_s29 = scalar_lea.hbm %s1870_s1, 8192 }
  0x38   : > { %p1431_p3 = scmp.lt.u32.totalorder %s1688_s6, %s1870_s1  ;;  %p1432_p6 = scmp.lt.u32.totalorder %s1430_s29, %s1425_s27 }
  0x39   : > { %p1428_p0 = pnand %p1427_p13, %p1426_p12  ;;  %p1434_p4 = scmp.lt.u32.totalorder %s1425_s27, %s1688_s6 }
  0x3a   : > { %p1433_p1 = por %p1432_p6, %p1431_p3 }
  0x3b   : > { %p1429_p2 = pneg %p1428_p0 }
  0x3c   : > { %p1435_p5 = por %p1434_p4, %p1433_p1 }
  0x3e   : > { %p1436_p8 = pnand %p1435_p5, %p1429_p2 }
  0x40   : > { %1439 = shalt.err (!%p1436_p8)
}
  0x41   : > { %s1440_s24 = scalar_lea.vmem %s1699_s21, 2048  ;;  %s1560_s23 = smov [#allocation7]  }
  0x42   : > { %p1441_p9 = scmp.ne.s32.totalorder %s1699_s21, %s1440_s24  ;;  %s1445_s7 = sshll.u32 %s1560_s23, 4  ;;  %s1446_s7 = int_to_ptr.vmem [resolvable:$false] %s1445_s7 }
  0x43   : > { %s1447_s26 = scalar_lea.vmem %s1446_s7, 4096  ;;  %p1448_p12 = scmp.lt.s32.totalorder %s1699_s21, %s1446_s7 }
  0x44   : > { %p1443_p7 = pnand %p1441_p9, %p1427_p13  ;;  %p1449_p0 = scmp.lt.s32.totalorder %s1447_s26, %s1440_s24 }
  0x46   : > { %p1444_p10 = pneg %p1443_p7  ;;  %p1450_p3 = por %p1449_p0, %p1448_p12 }
  0x48   : > { %p1451_p6 = pnand %p1450_p3, %p1444_p10 }
  0x4a   : > { %1454 = shalt.err (!%p1451_p6)
}
  0x4b   : > { %1261 = dma.hbm_to_vmem [thread:$0]  (!%p1692_p11), %s1688_s6, 2048, %s1699_s21, %s1701_s22, %s1558_s4, %s1558_s4, %s1559_s5  }
  0x4c   : > { %p1882_p13 = scmp.ne.s32.totalorder %s1879_s20, 0 }
  0x4d   : > { %p1883_p2 = scmp.ne.s32.totalorder (!%p1882_p13), %s1877_s18, 0 }
  0x4e   : > { %179 = sbr.rel (%p1882_p13) target bundleno = 720 (0x2d0), region = 28 }
  0x55   : > { %1514 = dma.done.wait (%p1883_p2), [#allocation5], 2048  }
  0x56   : > { %1516 = vsyncadd (%p1883_p2), [#allocation5], 4294965248  ;;  %s185_s27 = sand.u32 1, %s1531_s10   ;;  %p1884_p1 = scmp.ne.s32.totalorder %s1878_s19, 0 }
  0x57   : > { %s1160_s17 = sshll.u32 %s185_s27, 7  ;;  %s186_s28 = scalar_lea.sflag [#allocation8], %s185_s27 }
  0x58   : > { %s1739_s29 = scalar_lea.vmem [#allocation7], %s1160_s17 }
  0x59   : > { %1518 = dma.done.wait (%p1884_p1), %s186_s28, 2048  }
  0x5a   : > { %1520 = vsyncadd (%p1884_p1), %s186_s28, 4294965248  ;;  %s1161_s20 = sshll.u32 %s1539_s12, 7  ;;  %p212_p11 = scmp.eq.s32.totalorder %s1543_s13, 0 }
  0x5b   : > { %p213_p4 = scmp.eq.s32.totalorder %s1539_s12, 0 }
  0x5d   : > { %p214_p5 = pnand %p213_p4, %p212_p11 }
  0x5e   : > { %v1561_v0 = vmov (!%p214_p5), 0.0  }
  0x5f   : > { %217 = sbr.rel (%p214_p5) target bundleno = 111 (0x6f), region = 40  ;;  %218 = vst [vmem:[#allocation2] sm:$0xff] (!%p214_p5), %v1561_v0  ;;  %219 = vst [vmem:[#allocation2 + $0x8] sm:$0xff] (!%p214_p5), %v1561_v0 }
  0x60   : > { %220 = vst [vmem:[#allocation2 + $0x10] sm:$0xff] (!%p214_p5), %v1561_v0  ;;  %221 = vst [vmem:[#allocation2 + $0x18] sm:$0xff] (!%p214_p5), %v1561_v0 }
  0x61   : > { %222 = vst [vmem:[#allocation2 + $0x20] sm:$0xff] (!%p214_p5), %v1561_v0  ;;  %223 = vst [vmem:[#allocation2 + $0x28] sm:$0xff] (!%p214_p5), %v1561_v0 }
  0x62   : > { %224 = vst [vmem:[#allocation2 + $0x30] sm:$0xff] (!%p214_p5), %v1561_v0  ;;  %225 = vst [vmem:[#allocation2 + $0x38] sm:$0xff] (!%p214_p5), %v1561_v0 }
  0x63   : > { %226 = vst [vmem:[#allocation2 + $0x40] sm:$0xff] (!%p214_p5), %v1561_v0  ;;  %227 = vst [vmem:[#allocation2 + $0x48] sm:$0xff] (!%p214_p5), %v1561_v0 }
  0x64   : > { %228 = vst [vmem:[#allocation2 + $0x50] sm:$0xff] (!%p214_p5), %v1561_v0  ;;  %229 = vst [vmem:[#allocation2 + $0x58] sm:$0xff] (!%p214_p5), %v1561_v0 }
  0x65   : > { %230 = vst [vmem:[#allocation2 + $0x60] sm:$0xff] (!%p214_p5), %v1561_v0  ;;  %231 = vst [vmem:[#allocation2 + $0x68] sm:$0xff] (!%p214_p5), %v1561_v0 }
  0x66   : > { %232 = vst [vmem:[#allocation2 + $0x70] sm:$0xff] %v1561_v0  ;;  %233 = vst [vmem:[#allocation2 + $0x78] sm:$0xff] %v1561_v0 }
  0x67   : > { %234 = vst [vmem:[#allocation2 + $0x80] sm:$0xff] %v1561_v0  ;;  %235 = vst [vmem:[#allocation2 + $0x88] sm:$0xff] %v1561_v0 }
  0x68   : > { %236 = vst [vmem:[#allocation2 + $0x90] sm:$0xff] %v1561_v0  ;;  %237 = vst [vmem:[#allocation2 + $0x98] sm:$0xff] %v1561_v0 }
  0x69   : > { %238 = vst [vmem:[#allocation2 + $0xa0] sm:$0xff] %v1561_v0  ;;  %239 = vst [vmem:[#allocation2 + $0xa8] sm:$0xff] %v1561_v0 }
  0x6a   : > { %240 = vst [vmem:[#allocation2 + $0xb0] sm:$0xff] %v1561_v0  ;;  %241 = vst [vmem:[#allocation2 + $0xb8] sm:$0xff] %v1561_v0 }
  0x6b   : > { %242 = vst [vmem:[#allocation2 + $0xc0] sm:$0xff] %v1561_v0  ;;  %243 = vst [vmem:[#allocation2 + $0xc8] sm:$0xff] %v1561_v0 }
  0x6c   : > { %244 = vst [vmem:[#allocation2 + $0xd0] sm:$0xff] %v1561_v0  ;;  %245 = vst [vmem:[#allocation2 + $0xd8] sm:$0xff] %v1561_v0 }
  0x6d   : > { %246 = vst [vmem:[#allocation2 + $0xe0] sm:$0xff] %v1561_v0  ;;  %247 = vst [vmem:[#allocation2 + $0xe8] sm:$0xff] %v1561_v0 }
  0x6e   : > { %248 = vst [vmem:[#allocation2 + $0xf0] sm:$0xff] %v1561_v0  ;;  %249 = vst [vmem:[#allocation2 + $0xf8] sm:$0xff] %v1561_v0 }
  0x6f PF: > { %p1162_p8 = scmp.ne.s32.totalorder %s1543_s13, 0 }
  0x70   : > { %v1341_v1 = vld [vmem:[%s1739_s29 + $0x4] ss:$8 sps:$4 sm:$0xff] (!%p1162_p8)   ;;  %v1343_v2 = vld [vmem:[%s1739_s29] ss:$8 sps:$4 sm:$0xff] (!%p1162_p8)   ;;  %v1562_v3 = vmov (!%p1162_p8), 0   ;;  %s253_s18 = sshra.s32 (!%p1162_p8), %s1161_s20, 7 }
  0x71   : > { %252 = sbr.rel (%p1162_p8) target bundleno = 388 (0x184), region = 44  ;;  %481 = vmatprep.mubr.bf16.mxu0 (!%p1162_p8), %v1562_v3  ;;  %521 = vmatprep.mubr.bf16.mxu1 (!%p1162_p8), %v1562_v3  ;;  %v1344_v4 = vld [vmem:[%s1739_s29 + $0x14] ss:$8 sps:$4 sm:$0xff] (!%p1162_p8)   ;;  %v1346_v5 = vld [vmem:[%s1739_s29 + $0x10] ss:$8 sps:$4 sm:$0xff] (!%p1162_p8)   ;;  %s1163_s19 = sshll.u32 (!%p1162_p8), %s253_s18, 2 }
  0x72   : > { %449 = vmatprep.subr.bf16.mxu0 (!%p1162_p8), %v1341_v1  ;;  %1212 = vmatprep.subr.bf16.mxu1 (!%p1162_p8), %v1341_v1  ;;  %v1347_v6 = vld [vmem:[%s1739_s29 + $0x24] ss:$8 sps:$4 sm:$0xff] (!%p1162_p8)   ;;  %v1349_v7 = vld [vmem:[%s1739_s29 + $0x20] ss:$8 sps:$4 sm:$0xff] (!%p1162_p8)   ;;  %v1350_v8 = vld [vmem:[%s1739_s29 + $0x34] ss:$8 sps:$4 sm:$0xff] (!%p1162_p8)  }
  0x73   : > { %450 = vmatpush1.bf16.msra.mxu0 (!%p1162_p8), %v1343_v2  ;;  %1220 = vmatpush1.bf16.msra.mxu1 (!%p1162_p8), %v1343_v2  ;;  %s1762_s4 = scalar_lea.vmem (!%p1162_p8), [#allocation4], %s1163_s19  ;;  %v1352_v9 = vld [vmem:[%s1739_s29 + $0x30] ss:$8 sps:$4 sm:$0xff] (!%p1162_p8)   ;;  %v1353_v10 = vld [vmem:[%s1739_s29 + $0x44] ss:$8 sps:$4 sm:$0xff] (!%p1162_p8)  }
  0x74   : > { %451 = vmatprep.subr.bf16.mxu0 (!%p1162_p8), %v1344_v4  ;;  %1213 = vmatprep.subr.bf16.mxu1 (!%p1162_p8), %v1344_v4  ;;  %v1355_v11 = vld [vmem:[%s1739_s29 + $0x40] ss:$8 sps:$4 sm:$0xff] (!%p1162_p8)   ;;  %v1356_v12 = vld [vmem:[%s1739_s29 + $0x54] ss:$8 sps:$4 sm:$0xff] (!%p1162_p8)   ;;  %v1358_v13 = vld [vmem:[%s1739_s29 + $0x50] ss:$8 sps:$4 sm:$0xff] (!%p1162_p8)  }
  0x75   : > { %v1359_v14 = vld [vmem:[%s1739_s29 + $0x64] ss:$8 sps:$4 sm:$0xff] (!%p1162_p8)   ;;  %v1361_v15 = vld [vmem:[%s1739_s29 + $0x60] ss:$8 sps:$4 sm:$0xff] (!%p1162_p8)   ;;  %v1362_v16 = vld [vmem:[%s1739_s29 + $0x74] ss:$8 sps:$4 sm:$0xff] (!%p1162_p8)  }
  0x76   : > { %v1364_v17 = vld [vmem:[%s1739_s29 + $0x70] ss:$8 sps:$4 sm:$0xff] (!%p1162_p8)   ;;  %v1365_v18 = vld [vmem:[%s1762_s4] ss:$8 sps:$4 sm:$0xff] (!%p1162_p8)  }
  0x77   : > { %452 = vmatpush1.bf16.msra.mxu0 (!%p1162_p8), %v1346_v5  ;;  %1221 = vmatpush1.bf16.msra.mxu1 (!%p1162_p8), %v1346_v5  ;;  %v1366_v19 = vld [vmem:[%s1762_s4 + $0x40] ss:$8 sps:$4 sm:$0xff] (!%p1162_p8)   ;;  %v1367_v20 = vld [vmem:[%s1762_s4 + $0x10] ss:$8 sps:$4 sm:$0xff] (!%p1162_p8)  }
  0x78   : > { %453 = vmatprep.subr.bf16.mxu0 %v1347_v6  ;;  %1214 = vmatprep.subr.bf16.mxu1 %v1347_v6  ;;  %v1368_v21 = vld [vmem:[%s1762_s4 + $0x50] ss:$8 sps:$4 sm:$0xff]   ;;  %v1369_v22 = vld [vmem:[%s1762_s4 + $0x20] ss:$8 sps:$4 sm:$0xff]  }
  0x79   : > { %v1370_v23 = vld [vmem:[%s1762_s4 + $0x60] ss:$8 sps:$4 sm:$0xff]   ;;  %v1371_v24 = vld [vmem:[%s1762_s4 + $0x30] ss:$8 sps:$4 sm:$0xff]  }
  0x7a   : > { %v1372_v25 = vld [vmem:[%s1762_s4 + $0x70] ss:$8 sps:$4 sm:$0xff]   ;;  %v273_v26 = vld [vmem:[#allocation2] sm:$0xff]  ;;  %v274_v28 = vld [vmem:[#allocation2 + $0x8] sm:$0xff] }
  0x7b   : > { %454 = vmatpush1.bf16.msra.mxu0 %v1349_v7  ;;  %1222 = vmatpush1.bf16.msra.mxu1 %v1349_v7  ;;  %v289_v27 = vld [vmem:[#allocation2 + $0x80] sm:$0xff]  ;;  %v290_v29 = vld [vmem:[#allocation2 + $0x88] sm:$0xff]  ;;  %v275_v32 = vld [vmem:[#allocation2 + $0x10] sm:$0xff] }
  0x7c   : > { %455 = vmatprep.subr.bf16.mxu0 %v1350_v8  ;;  %1215 = vmatprep.subr.bf16.mxu1 %v1350_v8  ;;  %v291_v33 = vld [vmem:[#allocation2 + $0x90] sm:$0xff]  ;;  %v276_v38 = vld [vmem:[#allocation2 + $0x18] sm:$0xff]  ;;  %v277_v50 = vld [vmem:[#allocation2 + $0x20] sm:$0xff] }
  0x7d   : > { %v292_v39 = vld [vmem:[#allocation2 + $0x98] sm:$0xff]  ;;  %v293_v51 = vld [vmem:[#allocation2 + $0xa0] sm:$0xff]  ;;  %v278_v52 = vld [vmem:[#allocation2 + $0x28] sm:$0xff] }
  0x7e   : > { %v294_v53 = vld [vmem:[#allocation2 + $0xa8] sm:$0xff]  ;;  %v279_v56 = vld [vmem:[#allocation2 + $0x30] sm:$0xff]  ;;  %v280_v62 = vld [vmem:[#allocation2 + $0x38] sm:$0xff] }
  0x7f   : > { %456 = vmatpush1.bf16.msra.mxu0 %v1352_v9  ;;  %1223 = vmatpush1.bf16.msra.mxu1 %v1352_v9  ;;  %v295_v57 = vld [vmem:[#allocation2 + $0xb0] sm:$0xff]  ;;  %v296_v63 = vld [vmem:[#allocation2 + $0xb8] sm:$0xff] }
  0x80   : > { %457 = vmatprep.subr.bf16.mxu0 %v1353_v10  ;;  %1216 = vmatprep.subr.bf16.mxu1 %v1353_v10  ;;  %v281_v10 = vld [vmem:[#allocation2 + $0x40] sm:$0xff] }
  0x83   : > { %458 = vmatpush1.bf16.msra.mxu0 %v1355_v11  ;;  %1224 = vmatpush1.bf16.msra.mxu1 %v1355_v11  ;;  %v297_v11 = vld [vmem:[#allocation2 + $0xc0] sm:$0xff] }
  0x84   : > { %459 = vmatprep.subr.bf16.mxu0 %v1356_v12  ;;  %1217 = vmatprep.subr.bf16.mxu1 %v1356_v12  ;;  %v282_v12 = vld [vmem:[#allocation2 + $0x48] sm:$0xff] }
  0x87   : > { %460 = vmatpush1.bf16.msra.mxu0 %v1358_v13  ;;  %1225 = vmatpush1.bf16.msra.mxu1 %v1358_v13  ;;  %v298_v13 = vld [vmem:[#allocation2 + $0xc8] sm:$0xff] }
  0x88   : > { %461 = vmatprep.subr.bf16.mxu0 %v1359_v14  ;;  %1218 = vmatprep.subr.bf16.mxu1 %v1359_v14 }
  0x8b   : > { %462 = vmatpush1.bf16.msra.mxu0 %v1361_v15  ;;  %1226 = vmatpush1.bf16.msra.mxu1 %v1361_v15 }
  0x8c   : > { %463 = vmatprep.subr.bf16.mxu0 %v1362_v16  ;;  %1219 = vmatprep.subr.bf16.mxu1 %v1362_v16  ;;  %v283_v16 = vld [vmem:[#allocation2 + $0x50] sm:$0xff] }
  0x8f   : > { %464 = vmatpush1.bf16.msra.mxu0 %v1364_v17  ;;  %1227 = vmatpush1.bf16.msra.mxu1 %v1364_v17  ;;  %v299_v17 = vld [vmem:[#allocation2 + $0xd0] sm:$0xff] }
  0x92   : > { %482 = vmatmul.mubr.bf16.vlgmr.msra.gmra.mrb[0].mxu0 %v1365_v18  ;;  %522 = vmatmul.mubr.bf16.vlgmr.msra.gmra.mrb[0].mxu1 %v1366_v19 }
  0x93   : > { %491 = vmatprep.mubr.bf16.mxu0 %v1562_v3  ;;  %531 = vmatprep.mubr.bf16.mxu1 %v1562_v3 }
  0x9a   : > { %492 = vmatmul.mubr.bf16.gmra.mrb[4].mxu0 %v1367_v20  ;;  %532 = vmatmul.mubr.bf16.gmra.mrb[4].mxu1 %v1368_v21 }
  0x9b   : > { %501 = vmatprep.mubr.bf16.mxu0 %v1562_v3  ;;  %541 = vmatprep.mubr.bf16.mxu1 %v1562_v3 }
  0xa2   : > { %502 = vmatmul.mubr.bf16.gmra.mrb[8].mxu0 %v1369_v22  ;;  %542 = vmatmul.mubr.bf16.gmra.mrb[8].mxu1 %v1370_v23  ;;  %v284_v22 = vld [vmem:[#allocation2 + $0x58] sm:$0xff] }
  0xa3   : > { %511 = vmatprep.mubr.bf16.mxu0 %v1562_v3  ;;  %551 = vmatprep.mubr.bf16.mxu1 %v1562_v3  ;;  %v300_v23 = vld [vmem:[#allocation2 + $0xd8] sm:$0xff] }
  0xaa   : > { %512 = vmatmul.mubr.bf16.gmra.mrb[12].mxu0 %v1371_v24  ;;  %552 = vmatmul.mubr.bf16.gmra.mrb[12].mxu1 %v1372_v25 }
 0x165   : > { %v483_v30 = vpop.f32.mrb[0].mxu0  ;;  %v523_v31 = vpop.f32.mrb[0].mxu1 }
 0x166   : > { %v562_v34 = vadd.f32 %v483_v30, %v273_v26  ;;  %v578_v35 = vadd.f32 %v523_v31, %v289_v27  ;;  %v485_v36 = vpop.f32.mrb[1].mxu0  ;;  %v525_v37 = vpop.f32.mrb[1].mxu1 }
 0x167   : > { %v563_v40 = vadd.f32 %v485_v36, %v274_v28  ;;  %v579_v41 = vadd.f32 %v525_v37, %v290_v29  ;;  %v487_v42 = vpop.f32.mrb[2].mxu0  ;;  %v527_v43 = vpop.f32.mrb[2].mxu1  ;;  %v286_v36 = vld [vmem:[#allocation2 + $0x68] sm:$0xff] }
 0x168   : > { %594 = vst [vmem:[#allocation2] sm:$0xff] %v562_v34  ;;  %610 = vst [vmem:[#allocation2 + $0x80] sm:$0xff] %v578_v35  ;;  %v564_v44 = vadd.f32 %v487_v42, %v275_v32  ;;  %v580_v45 = vadd.f32 %v527_v43, %v291_v33  ;;  %v489_v46 = vpop.f32.mrb[3].mxu0  ;;  %v529_v47 = vpop.f32.mrb[3].mxu1  ;;  %v285_v34 = vld [vmem:[#allocation2 + $0x60] sm:$0xff]  ;;  %v302_v37 = vld [vmem:[#allocation2 + $0xe8] sm:$0xff] }
 0x169   : > { %595 = vst [vmem:[#allocation2 + $0x8] sm:$0xff] %v563_v40  ;;  %611 = vst [vmem:[#allocation2 + $0x88] sm:$0xff] %v579_v41  ;;  %v565_v48 = vadd.f32 %v489_v46, %v276_v38  ;;  %v581_v49 = vadd.f32 %v529_v47, %v292_v39  ;;  %v301_v35 = vld [vmem:[#allocation2 + $0xe0] sm:$0xff]  ;;  %v287_v40 = vld [vmem:[#allocation2 + $0x70] sm:$0xff] }
 0x16a   : > { %596 = vst [vmem:[#allocation2 + $0x10] sm:$0xff] %v564_v44  ;;  %612 = vst [vmem:[#allocation2 + $0x90] sm:$0xff] %v580_v45  ;;  %v303_v41 = vld [vmem:[#allocation2 + $0xf0] sm:$0xff]  ;;  %v288_v46 = vld [vmem:[#allocation2 + $0x78] sm:$0xff] }
 0x16b   : > { %597 = vst [vmem:[#allocation2 + $0x18] sm:$0xff] %v565_v48  ;;  %613 = vst [vmem:[#allocation2 + $0x98] sm:$0xff] %v581_v49  ;;  %v304_v47 = vld [vmem:[#allocation2 + $0xf8] sm:$0xff] }
 0x16d   : > { %v493_v54 = vpop.f32.mrb[4].mxu0  ;;  %v533_v55 = vpop.f32.mrb[4].mxu1 }
 0x16e   : > { %v566_v58 = vadd.f32 %v493_v54, %v277_v50  ;;  %v582_v59 = vadd.f32 %v533_v55, %v293_v51  ;;  %v495_v60 = vpop.f32.mrb[5].mxu0  ;;  %v535_v61 = vpop.f32.mrb[5].mxu1 }
 0x16f   : > { %v567_v0 = vadd.f32 %v495_v60, %v278_v52  ;;  %v583_v1 = vadd.f32 %v535_v61, %v294_v53  ;;  %v497_v2 = vpop.f32.mrb[6].mxu0  ;;  %v537_v3 = vpop.f32.mrb[6].mxu1 }
 0x170   : > { %598 = vst [vmem:[#allocation2 + $0x20] sm:$0xff] %v566_v58  ;;  %614 = vst [vmem:[#allocation2 + $0xa0] sm:$0xff] %v582_v59  ;;  %v568_v4 = vadd.f32 %v497_v2, %v279_v56  ;;  %v584_v5 = vadd.f32 %v537_v3, %v295_v57  ;;  %v499_v6 = vpop.f32.mrb[7].mxu0  ;;  %v539_v7 = vpop.f32.mrb[7].mxu1 }
 0x171   : > { %599 = vst [vmem:[#allocation2 + $0x28] sm:$0xff] %v567_v0  ;;  %615 = vst [vmem:[#allocation2 + $0xa8] sm:$0xff] %v583_v1  ;;  %v569_v8 = vadd.f32 %v499_v6, %v280_v62  ;;  %v585_v9 = vadd.f32 %v539_v7, %v296_v63 }
 0x172   : > { %600 = vst [vmem:[#allocation2 + $0x30] sm:$0xff] %v568_v4  ;;  %616 = vst [vmem:[#allocation2 + $0xb0] sm:$0xff] %v584_v5 }
 0x173   : > { %601 = vst [vmem:[#allocation2 + $0x38] sm:$0xff] %v569_v8  ;;  %617 = vst [vmem:[#allocation2 + $0xb8] sm:$0xff] %v585_v9 }
 0x175   : > { %v503_v14 = vpop.f32.mrb[8].mxu0  ;;  %v543_v15 = vpop.f32.mrb[8].mxu1 }
 0x176   : > { %v570_v18 = vadd.f32 %v503_v14, %v281_v10  ;;  %v586_v19 = vadd.f32 %v543_v15, %v297_v11  ;;  %v505_v20 = vpop.f32.mrb[9].mxu0  ;;  %v545_v21 = vpop.f32.mrb[9].mxu1 }
 0x177   : > { %v571_v24 = vadd.f32 %v505_v20, %v282_v12  ;;  %v587_v25 = vadd.f32 %v545_v21, %v298_v13  ;;  %v507_v26 = vpop.f32.mrb[10].mxu0  ;;  %v547_v27 = vpop.f32.mrb[10].mxu1 }
 0x178   : > { %602 = vst [vmem:[#allocation2 + $0x40] sm:$0xff] %v570_v18  ;;  %618 = vst [vmem:[#allocation2 + $0xc0] sm:$0xff] %v586_v19  ;;  %v572_v28 = vadd.f32 %v507_v26, %v283_v16  ;;  %v588_v29 = vadd.f32 %v547_v27, %v299_v17  ;;  %v509_v30 = vpop.f32.mrb[11].mxu0  ;;  %v549_v31 = vpop.f32.mrb[11].mxu1 }
 0x179   : > { %603 = vst [vmem:[#allocation2 + $0x48] sm:$0xff] %v571_v24  ;;  %619 = vst [vmem:[#allocation2 + $0xc8] sm:$0xff] %v587_v25  ;;  %v573_v32 = vadd.f32 %v509_v30, %v284_v22  ;;  %v589_v33 = vadd.f32 %v549_v31, %v300_v23 }
 0x17a   : > { %604 = vst [vmem:[#allocation2 + $0x50] sm:$0xff] %v572_v28  ;;  %620 = vst [vmem:[#allocation2 + $0xd0] sm:$0xff] %v588_v29 }
 0x17b   : > { %605 = vst [vmem:[#allocation2 + $0x58] sm:$0xff] %v573_v32  ;;  %621 = vst [vmem:[#allocation2 + $0xd8] sm:$0xff] %v589_v33 }
 0x17d   : > { %v513_v38 = vpop.f32.mrb[12].mxu0  ;;  %v553_v39 = vpop.f32.mrb[12].mxu1 }
 0x17e   : > { %v574_v42 = vadd.f32 %v513_v38, %v285_v34  ;;  %v590_v43 = vadd.f32 %v553_v39, %v301_v35  ;;  %v515_v44 = vpop.f32.mrb[13].mxu0  ;;  %v555_v45 = vpop.f32.mrb[13].mxu1 }
 0x17f   : > { %v575_v48 = vadd.f32 %v515_v44, %v286_v36  ;;  %v591_v49 = vadd.f32 %v555_v45, %v302_v37  ;;  %v517_v50 = vpop.f32.mrb[14].mxu0  ;;  %v557_v51 = vpop.f32.mrb[14].mxu1 }
 0x180   : > { %606 = vst [vmem:[#allocation2 + $0x60] sm:$0xff] %v574_v42  ;;  %622 = vst [vmem:[#allocation2 + $0xe0] sm:$0xff] %v590_v43  ;;  %v576_v52 = vadd.f32 %v517_v50, %v287_v40  ;;  %v592_v53 = vadd.f32 %v557_v51, %v303_v41  ;;  %v519_v54 = vpop.f32.mrb[15].mxu0  ;;  %v559_v55 = vpop.f32.mrb[15].mxu1 }
 0x181   : > { %607 = vst [vmem:[#allocation2 + $0x68] sm:$0xff] %v575_v48  ;;  %623 = vst [vmem:[#allocation2 + $0xe8] sm:$0xff] %v591_v49  ;;  %v577_v56 = vadd.f32 %v519_v54, %v288_v46  ;;  %v593_v57 = vadd.f32 %v559_v55, %v304_v47 }
 0x182   : > { %608 = vst [vmem:[#allocation2 + $0x70] sm:$0xff] %v576_v52  ;;  %624 = vst [vmem:[#allocation2 + $0xf0] sm:$0xff] %v592_v53 }
 0x183   : > { %609 = vst [vmem:[#allocation2 + $0x78] sm:$0xff] %v577_v56  ;;  %625 = vst [vmem:[#allocation2 + $0xf8] sm:$0xff] %v593_v57 }
 0x184 PF: > { %p626_p9 = scmp.eq.s32.totalorder %s1543_s13, 1 }
 0x186   : > { %p627_p7 = pnand %p626_p9, %p213_p4 }
 0x187   : > { %v631_v58 = vld [vmem:[#allocation2] sm:$0xff] (!%p627_p7)  ;;  %v633_v59 = vld [vmem:[#allocation2 + $0x10] sm:$0xff] (!%p627_p7)  ;;  %v632_v60 = vld [vmem:[#allocation2 + $0x8] sm:$0xff] (!%p627_p7)  ;;  %v1563_v1 = vmov (!%p627_p7), 0.0  }
 0x188   : > { %630 = sbr.rel (%p627_p7) target bundleno = 417 (0x1a1), region = 48  ;;  %v663_v61 = vpack.c.bf16 (!%p627_p7), %v633_v59, %v631_v58  ;;  %v634_v62 = vld [vmem:[#allocation2 + $0x18] sm:$0xff] (!%p627_p7)  ;;  %v635_v63 = vld [vmem:[#allocation2 + $0x20] sm:$0xff] (!%p627_p7)  ;;  %v637_v0 = vld [vmem:[#allocation2 + $0x30] sm:$0xff] (!%p627_p7)  ;;  %695 = vst [vmem:[#allocation9] sm:$0xff] (!%p627_p7), %v1563_v1 }
 0x189   : > { %696 = vst [vmem:[#allocation9 + $0x8] sm:$0xff] (!%p627_p7), %v1563_v1  ;;  %697 = vst [vmem:[#allocation9 + $0x10] sm:$0xff] (!%p627_p7), %v1563_v1  ;;  %v664_v2 = vpack.c.bf16 (!%p627_p7), %v634_v62, %v632_v60  ;;  %v665_v3 = vpack.c.bf16 (!%p627_p7), %v637_v0, %v635_v63  ;;  %v636_v4 = vld [vmem:[#allocation2 + $0x28] sm:$0xff] (!%p627_p7)  ;;  %v638_v5 = vld [vmem:[#allocation2 + $0x38] sm:$0xff] (!%p627_p7) }
 0x18a   : > { %698 = vst [vmem:[#allocation9 + $0x18] sm:$0xff] (!%p627_p7), %v1563_v1  ;;  %699 = vst [vmem:[#allocation9 + $0x20] sm:$0xff] (!%p627_p7), %v1563_v1  ;;  %v639_v6 = vld [vmem:[#allocation2 + $0x40] sm:$0xff] (!%p627_p7)  ;;  %v666_v7 = vpack.c.bf16 (!%p627_p7), %v638_v5, %v636_v4  ;;  %v641_v8 = vld [vmem:[#allocation2 + $0x50] sm:$0xff] (!%p627_p7) }
 0x18b   : > { %700 = vst [vmem:[#allocation9 + $0x28] sm:$0xff] (!%p627_p7), %v1563_v1  ;;  %701 = vst [vmem:[#allocation9 + $0x30] sm:$0xff] (!%p627_p7), %v1563_v1  ;;  %v640_v9 = vld [vmem:[#allocation2 + $0x48] sm:$0xff] (!%p627_p7)  ;;  %v642_v10 = vld [vmem:[#allocation2 + $0x58] sm:$0xff] (!%p627_p7)  ;;  %v667_v11 = vpack.c.bf16 (!%p627_p7), %v641_v8, %v639_v6 }
 0x18c   : > { %702 = vst [vmem:[#allocation9 + $0x38] sm:$0xff] (!%p627_p7), %v1563_v1  ;;  %703 = vst [vmem:[#allocation9 + $0x40] sm:$0xff] (!%p627_p7), %v1563_v1  ;;  %v668_v12 = vpack.c.bf16 (!%p627_p7), %v642_v10, %v640_v9  ;;  %v643_v13 = vld [vmem:[#allocation2 + $0x60] sm:$0xff] (!%p627_p7)  ;;  %v645_v14 = vld [vmem:[#allocation2 + $0x70] sm:$0xff] (!%p627_p7) }
 0x18d   : > { %704 = vst [vmem:[#allocation9 + $0x48] sm:$0xff] (!%p627_p7), %v1563_v1  ;;  %705 = vst [vmem:[#allocation9 + $0x50] sm:$0xff] (!%p627_p7), %v1563_v1  ;;  %v644_v15 = vld [vmem:[#allocation2 + $0x68] sm:$0xff] (!%p627_p7)  ;;  %v669_v16 = vpack.c.bf16 (!%p627_p7), %v645_v14, %v643_v13  ;;  %v646_v17 = vld [vmem:[#allocation2 + $0x78] sm:$0xff] (!%p627_p7) }
 0x18e   : > { %706 = vst [vmem:[#allocation9 + $0x58] sm:$0xff] (!%p627_p7), %v1563_v1  ;;  %707 = vst [vmem:[#allocation9 + $0x60] sm:$0xff] (!%p627_p7), %v1563_v1  ;;  %v647_v18 = vld [vmem:[#allocation2 + $0x80] sm:$0xff] (!%p627_p7)  ;;  %v649_v19 = vld [vmem:[#allocation2 + $0x90] sm:$0xff] (!%p627_p7)  ;;  %v670_v20 = vpack.c.bf16 (!%p627_p7), %v646_v17, %v644_v15 }
 0x18f   : > { %708 = vst [vmem:[#allocation9 + $0x68] sm:$0xff] %v1563_v1  ;;  %709 = vst [vmem:[#allocation9 + $0x70] sm:$0xff] %v1563_v1  ;;  %v671_v21 = vpack.c.bf16 %v649_v19, %v647_v18  ;;  %v648_v22 = vld [vmem:[#allocation2 + $0x88] sm:$0xff]  ;;  %v650_v23 = vld [vmem:[#allocation2 + $0x98] sm:$0xff] }
 0x190   : > { %710 = vst [vmem:[#allocation9 + $0x78] sm:$0xff] %v1563_v1  ;;  %711 = vst [vmem:[#allocation9 + $0x80] sm:$0xff] %v1563_v1  ;;  %v651_v24 = vld [vmem:[#allocation2 + $0xa0] sm:$0xff]  ;;  %v672_v25 = vpack.c.bf16 %v650_v23, %v648_v22  ;;  %v653_v26 = vld [vmem:[#allocation2 + $0xb0] sm:$0xff] }
 0x191   : > { %712 = vst [vmem:[#allocation9 + $0x88] sm:$0xff] %v1563_v1  ;;  %713 = vst [vmem:[#allocation9 + $0x90] sm:$0xff] %v1563_v1  ;;  %v652_v27 = vld [vmem:[#allocation2 + $0xa8] sm:$0xff]  ;;  %v654_v28 = vld [vmem:[#allocation2 + $0xb8] sm:$0xff]  ;;  %v673_v29 = vpack.c.bf16 %v653_v26, %v651_v24 }
 0x192   : > { %714 = vst [vmem:[#allocation9 + $0x98] sm:$0xff] %v1563_v1  ;;  %715 = vst [vmem:[#allocation9 + $0xa0] sm:$0xff] %v1563_v1  ;;  %v674_v30 = vpack.c.bf16 %v654_v28, %v652_v27  ;;  %v655_v31 = vld [vmem:[#allocation2 + $0xc0] sm:$0xff]  ;;  %v657_v32 = vld [vmem:[#allocation2 + $0xd0] sm:$0xff] }
 0x193   : > { %716 = vst [vmem:[#allocation9 + $0xa8] sm:$0xff] %v1563_v1  ;;  %717 = vst [vmem:[#allocation9 + $0xb0] sm:$0xff] %v1563_v1  ;;  %v656_v33 = vld [vmem:[#allocation2 + $0xc8] sm:$0xff]  ;;  %v675_v34 = vpack.c.bf16 %v657_v32, %v655_v31  ;;  %v658_v35 = vld [vmem:[#allocation2 + $0xd8] sm:$0xff] }
 0x194   : > { %718 = vst [vmem:[#allocation9 + $0xb8] sm:$0xff] %v1563_v1  ;;  %719 = vst [vmem:[#allocation9 + $0xc0] sm:$0xff] %v1563_v1  ;;  %v659_v36 = vld [vmem:[#allocation2 + $0xe0] sm:$0xff]  ;;  %v661_v37 = vld [vmem:[#allocation2 + $0xf0] sm:$0xff]  ;;  %v676_v38 = vpack.c.bf16 %v658_v35, %v656_v33 }
 0x195   : > { %720 = vst [vmem:[#allocation9 + $0xc8] sm:$0xff] %v1563_v1  ;;  %721 = vst [vmem:[#allocation9 + $0xd0] sm:$0xff] %v1563_v1  ;;  %v677_v39 = vpack.c.bf16 %v661_v37, %v659_v36  ;;  %v660_v40 = vld [vmem:[#allocation2 + $0xe8] sm:$0xff]  ;;  %v662_v41 = vld [vmem:[#allocation2 + $0xf8] sm:$0xff] }
 0x196   : > { %722 = vst [vmem:[#allocation9 + $0xd8] sm:$0xff] %v1563_v1  ;;  %723 = vst [vmem:[#allocation9 + $0xe0] sm:$0xff] %v1563_v1  ;;  %v678_v42 = vpack.c.bf16 %v662_v41, %v660_v40 }
 0x197   : > { %724 = vst [vmem:[#allocation9 + $0xe8] sm:$0xff] %v1563_v1  ;;  %725 = vst [vmem:[#allocation9 + $0xf0] sm:$0xff] %v1563_v1 }
 0x198   : > { %726 = vst [vmem:[#allocation9 + $0xf8] sm:$0xff] %v1563_v1  ;;  %679 = vst [vmem:[#allocation3] sm:$0xff] %v663_v61 }
 0x199   : > { %680 = vst [vmem:[#allocation3 + $0x8] sm:$0xff] %v664_v2  ;;  %681 = vst [vmem:[#allocation3 + $0x10] sm:$0xff] %v665_v3 }
 0x19a   : > { %682 = vst [vmem:[#allocation3 + $0x18] sm:$0xff] %v666_v7  ;;  %683 = vst [vmem:[#allocation3 + $0x20] sm:$0xff] %v667_v11 }
 0x19b   : > { %684 = vst [vmem:[#allocation3 + $0x28] sm:$0xff] %v668_v12  ;;  %685 = vst [vmem:[#allocation3 + $0x30] sm:$0xff] %v669_v16 }
 0x19c   : > { %686 = vst [vmem:[#allocation3 + $0x38] sm:$0xff] %v670_v20  ;;  %687 = vst [vmem:[#allocation3 + $0x40] sm:$0xff] %v671_v21 }
 0x19d   : > { %688 = vst [vmem:[#allocation3 + $0x48] sm:$0xff] %v672_v25  ;;  %689 = vst [vmem:[#allocation3 + $0x50] sm:$0xff] %v673_v29 }
 0x19e   : > { %690 = vst [vmem:[#allocation3 + $0x58] sm:$0xff] %v674_v30  ;;  %691 = vst [vmem:[#allocation3 + $0x60] sm:$0xff] %v675_v34 }
 0x19f   : > { %692 = vst [vmem:[#allocation3 + $0x68] sm:$0xff] %v676_v38  ;;  %693 = vst [vmem:[#allocation3 + $0x70] sm:$0xff] %v677_v39 }
 0x1a0   : > { %694 = vst [vmem:[#allocation3 + $0x78] sm:$0xff] %v678_v42 }
 0x1a1 PF: > { %p1188_p10 = scmp.ne.s32.totalorder %s1543_s13, 1 }
 0x1a2   : > { %v1373_v43 = vld [vmem:[%s1739_s29 + $0x4] ss:$8 sps:$4 sm:$0xff] (!%p1188_p10)   ;;  %v1375_v44 = vld [vmem:[%s1739_s29] ss:$8 sps:$4 sm:$0xff] (!%p1188_p10)   ;;  %v1564_v45 = vmov (!%p1188_p10), 0   ;;  %s730_s13 = sshra.s32 (!%p1188_p10), %s1161_s20, 7 }
 0x1a3   : > { %729 = sbr.rel (%p1188_p10) target bundleno = 694 (0x2b6), region = 52  ;;  %902 = vmatprep.mubr.bf16.mxu0 (!%p1188_p10), %v1564_v45  ;;  %942 = vmatprep.mubr.bf16.mxu1 (!%p1188_p10), %v1564_v45  ;;  %v1376_v46 = vld [vmem:[%s1739_s29 + $0x14] ss:$8 sps:$4 sm:$0xff] (!%p1188_p10)   ;;  %v1378_v47 = vld [vmem:[%s1739_s29 + $0x10] ss:$8 sps:$4 sm:$0xff] (!%p1188_p10)   ;;  %s1189_s5 = sshll.u32 (!%p1188_p10), %s730_s13, 3 }
 0x1a4   : > { %870 = vmatprep.subr.bf16.mxu0 (!%p1188_p10), %v1373_v43  ;;  %1228 = vmatprep.subr.bf16.mxu1 (!%p1188_p10), %v1373_v43  ;;  %v1379_v48 = vld [vmem:[%s1739_s29 + $0x24] ss:$8 sps:$4 sm:$0xff] (!%p1188_p10)   ;;  %v1381_v49 = vld [vmem:[%s1739_s29 + $0x20] ss:$8 sps:$4 sm:$0xff] (!%p1188_p10)   ;;  %v1382_v50 = vld [vmem:[%s1739_s29 + $0x34] ss:$8 sps:$4 sm:$0xff] (!%p1188_p10)  }
 0x1a5   : > { %871 = vmatpush1.bf16.msra.mxu0 (!%p1188_p10), %v1375_v44  ;;  %1236 = vmatpush1.bf16.msra.mxu1 (!%p1188_p10), %v1375_v44  ;;  %v1384_v51 = vld [vmem:[%s1739_s29 + $0x30] ss:$8 sps:$4 sm:$0xff] (!%p1188_p10)   ;;  %v1385_v52 = vld [vmem:[%s1739_s29 + $0x44] ss:$8 sps:$4 sm:$0xff] (!%p1188_p10)   ;;  %v1387_v53 = vld [vmem:[%s1739_s29 + $0x40] ss:$8 sps:$4 sm:$0xff] (!%p1188_p10)  }
 0x1a6   : > { %872 = vmatprep.subr.bf16.mxu0 (!%p1188_p10), %v1376_v46  ;;  %1229 = vmatprep.subr.bf16.mxu1 (!%p1188_p10), %v1376_v46  ;;  %v1388_v54 = vld [vmem:[%s1739_s29 + $0x54] ss:$8 sps:$4 sm:$0xff] (!%p1188_p10)   ;;  %v1390_v55 = vld [vmem:[%s1739_s29 + $0x50] ss:$8 sps:$4 sm:$0xff] (!%p1188_p10)   ;;  %v1391_v56 = vld [vmem:[%s1739_s29 + $0x64] ss:$8 sps:$4 sm:$0xff] (!%p1188_p10)  }
 0x1a7   : > { %v1393_v57 = vld [vmem:[%s1739_s29 + $0x60] ss:$8 sps:$4 sm:$0xff] (!%p1188_p10)   ;;  %v1394_v58 = vld [vmem:[%s1739_s29 + $0x74] ss:$8 sps:$4 sm:$0xff] (!%p1188_p10)   ;;  %v1396_v59 = vld [vmem:[%s1739_s29 + $0x70] ss:$8 sps:$4 sm:$0xff] (!%p1188_p10)  }
 0x1a8   : > { %s733_s6 = scalar_lea.vmem (!%p1188_p10), [#allocation3], %s1189_s5  ;;  %v742_v4 = vld [vmem:[#allocation9] sm:$0xff] (!%p1188_p10)  ;;  %v743_v6 = vld [vmem:[#allocation9 + $0x8] sm:$0xff] (!%p1188_p10)  ;;  %v744_v10 = vld [vmem:[#allocation9 + $0x10] sm:$0xff] (!%p1188_p10) }
 0x1a9   : > { %873 = vmatpush1.bf16.msra.mxu0 (!%p1188_p10), %v1378_v47  ;;  %1237 = vmatpush1.bf16.msra.mxu1 (!%p1188_p10), %v1378_v47  ;;  %v734_v60 = vld [vmem:[%s733_s6] sm:$0xff] (!%p1188_p10)  ;;  %v735_v62 = vld [vmem:[%s733_s6 + $0x10] sm:$0xff] (!%p1188_p10)  ;;  %v759_v7 = vld [vmem:[#allocation9 + $0x88] sm:$0xff] (!%p1188_p10) }
 0x1aa   : > { %874 = vmatprep.subr.bf16.mxu0 %v1379_v48  ;;  %1230 = vmatprep.subr.bf16.mxu1 %v1379_v48  ;;  %v738_v61 = vld [vmem:[%s733_s6 + $0x40] sm:$0xff]  ;;  %v739_v63 = vld [vmem:[%s733_s6 + $0x50] sm:$0xff]  ;;  %v745_v16 = vld [vmem:[#allocation9 + $0x18] sm:$0xff] }
 0x1ab   : > { %v736_v0 = vld [vmem:[%s733_s6 + $0x20] sm:$0xff]  ;;  %v737_v2 = vld [vmem:[%s733_s6 + $0x30] sm:$0xff]  ;;  %v761_v17 = vld [vmem:[#allocation9 + $0x98] sm:$0xff] }
 0x1ac   : > { %v740_v1 = vld [vmem:[%s733_s6 + $0x60] sm:$0xff]  ;;  %v741_v3 = vld [vmem:[%s733_s6 + $0x70] sm:$0xff]  ;;  %v747_v30 = vld [vmem:[#allocation9 + $0x28] sm:$0xff] }
 0x1ad   : > { %875 = vmatpush1.bf16.msra.mxu0 %v1381_v49  ;;  %1238 = vmatpush1.bf16.msra.mxu1 %v1381_v49  ;;  %v758_v5 = vld [vmem:[#allocation9 + $0x80] sm:$0xff]  ;;  %v760_v11 = vld [vmem:[#allocation9 + $0x90] sm:$0xff]  ;;  %v763_v31 = vld [vmem:[#allocation9 + $0xa8] sm:$0xff] }
 0x1ae   : > { %876 = vmatprep.subr.bf16.mxu0 %v1382_v50  ;;  %1231 = vmatprep.subr.bf16.mxu1 %v1382_v50  ;;  %v746_v28 = vld [vmem:[#allocation9 + $0x20] sm:$0xff]  ;;  %v748_v34 = vld [vmem:[#allocation9 + $0x30] sm:$0xff]  ;;  %v749_v40 = vld [vmem:[#allocation9 + $0x38] sm:$0xff] }
 0x1af   : > { %v762_v29 = vld [vmem:[#allocation9 + $0xa0] sm:$0xff]  ;;  %v764_v35 = vld [vmem:[#allocation9 + $0xb0] sm:$0xff]  ;;  %v765_v41 = vld [vmem:[#allocation9 + $0xb8] sm:$0xff] }
 0x1b1   : > { %877 = vmatpush1.bf16.msra.mxu0 %v1384_v51  ;;  %1239 = vmatpush1.bf16.msra.mxu1 %v1384_v51 }
 0x1b2   : > { %878 = vmatprep.subr.bf16.mxu0 %v1385_v52  ;;  %1232 = vmatprep.subr.bf16.mxu1 %v1385_v52  ;;  %v750_v52 = vld [vmem:[#allocation9 + $0x40] sm:$0xff] }
 0x1b5   : > { %879 = vmatpush1.bf16.msra.mxu0 %v1387_v53  ;;  %1240 = vmatpush1.bf16.msra.mxu1 %v1387_v53  ;;  %v766_v53 = vld [vmem:[#allocation9 + $0xc0] sm:$0xff] }
 0x1b6   : > { %880 = vmatprep.subr.bf16.mxu0 %v1388_v54  ;;  %1233 = vmatprep.subr.bf16.mxu1 %v1388_v54  ;;  %v751_v54 = vld [vmem:[#allocation9 + $0x48] sm:$0xff] }
 0x1b9   : > { %881 = vmatpush1.bf16.msra.mxu0 %v1390_v55  ;;  %1241 = vmatpush1.bf16.msra.mxu1 %v1390_v55  ;;  %v767_v55 = vld [vmem:[#allocation9 + $0xc8] sm:$0xff] }
 0x1ba   : > { %882 = vmatprep.subr.bf16.mxu0 %v1391_v56  ;;  %1234 = vmatprep.subr.bf16.mxu1 %v1391_v56 }
 0x1bd   : > { %883 = vmatpush1.bf16.msra.mxu0 %v1393_v57  ;;  %1242 = vmatpush1.bf16.msra.mxu1 %v1393_v57 }
 0x1be   : > { %884 = vmatprep.subr.bf16.mxu0 %v1394_v58  ;;  %1235 = vmatprep.subr.bf16.mxu1 %v1394_v58  ;;  %v752_v58 = vld [vmem:[#allocation9 + $0x50] sm:$0xff] }
 0x1c1   : > { %885 = vmatpush1.bf16.msra.mxu0 %v1396_v59  ;;  %1243 = vmatpush1.bf16.msra.mxu1 %v1396_v59  ;;  %v768_v59 = vld [vmem:[#allocation9 + $0xd0] sm:$0xff] }
 0x1c4   : > { %903 = vmatmul.mubr.bf16.vlgmr.msra.gmra.mrb[0].mxu0 %v734_v60  ;;  %943 = vmatmul.mubr.bf16.vlgmr.msra.gmra.mrb[0].mxu1 %v738_v61 }
 0x1c5   : > { %912 = vmatprep.mubr.bf16.mxu0 %v1564_v45  ;;  %952 = vmatprep.mubr.bf16.mxu1 %v1564_v45 }
 0x1cc   : > { %913 = vmatmul.mubr.bf16.gmra.mrb[4].mxu0 %v735_v62  ;;  %953 = vmatmul.mubr.bf16.gmra.mrb[4].mxu1 %v739_v63 }
 0x1cd   : > { %922 = vmatprep.mubr.bf16.mxu0 %v1564_v45  ;;  %962 = vmatprep.mubr.bf16.mxu1 %v1564_v45 }
 0x1d4   : > { %923 = vmatmul.mubr.bf16.gmra.mrb[8].mxu0 %v736_v0  ;;  %963 = vmatmul.mubr.bf16.gmra.mrb[8].mxu1 %v740_v1  ;;  %v753_v0 = vld [vmem:[#allocation9 + $0x58] sm:$0xff] }
 0x1d5   : > { %932 = vmatprep.mubr.bf16.mxu0 %v1564_v45  ;;  %972 = vmatprep.mubr.bf16.mxu1 %v1564_v45  ;;  %v769_v1 = vld [vmem:[#allocation9 + $0xd8] sm:$0xff] }
 0x1dc   : > { %933 = vmatmul.mubr.bf16.gmra.mrb[12].mxu0 %v737_v2  ;;  %973 = vmatmul.mubr.bf16.gmra.mrb[12].mxu1 %v741_v3 }
 0x297   : > { %v904_v8 = vpop.f32.mrb[0].mxu0  ;;  %v944_v9 = vpop.f32.mrb[0].mxu1 }
 0x298   : > { %v983_v12 = vadd.f32 %v904_v8, %v742_v4  ;;  %v999_v13 = vadd.f32 %v944_v9, %v758_v5  ;;  %v906_v14 = vpop.f32.mrb[1].mxu0  ;;  %v946_v15 = vpop.f32.mrb[1].mxu1 }
 0x299   : > { %v984_v18 = vadd.f32 %v906_v14, %v743_v6  ;;  %v1000_v19 = vadd.f32 %v946_v15, %v759_v7  ;;  %v908_v20 = vpop.f32.mrb[2].mxu0  ;;  %v948_v21 = vpop.f32.mrb[2].mxu1  ;;  %v755_v14 = vld [vmem:[#allocation9 + $0x68] sm:$0xff] }
 0x29a   : > { %1015 = vst [vmem:[#allocation9] sm:$0xff] %v983_v12  ;;  %1031 = vst [vmem:[#allocation9 + $0x80] sm:$0xff] %v999_v13  ;;  %v985_v22 = vadd.f32 %v908_v20, %v744_v10  ;;  %v1001_v23 = vadd.f32 %v948_v21, %v760_v11  ;;  %v910_v24 = vpop.f32.mrb[3].mxu0  ;;  %v950_v25 = vpop.f32.mrb[3].mxu1  ;;  %v754_v12 = vld [vmem:[#allocation9 + $0x60] sm:$0xff]  ;;  %v771_v15 = vld [vmem:[#allocation9 + $0xe8] sm:$0xff] }
 0x29b   : > { %1016 = vst [vmem:[#allocation9 + $0x8] sm:$0xff] %v984_v18  ;;  %1032 = vst [vmem:[#allocation9 + $0x88] sm:$0xff] %v1000_v19  ;;  %v986_v26 = vadd.f32 %v910_v24, %v745_v16  ;;  %v1002_v27 = vadd.f32 %v950_v25, %v761_v17  ;;  %v770_v13 = vld [vmem:[#allocation9 + $0xe0] sm:$0xff]  ;;  %v756_v18 = vld [vmem:[#allocation9 + $0x70] sm:$0xff] }
 0x29c   : > { %1017 = vst [vmem:[#allocation9 + $0x10] sm:$0xff] %v985_v22  ;;  %1033 = vst [vmem:[#allocation9 + $0x90] sm:$0xff] %v1001_v23  ;;  %v772_v19 = vld [vmem:[#allocation9 + $0xf0] sm:$0xff]  ;;  %v757_v24 = vld [vmem:[#allocation9 + $0x78] sm:$0xff] }
 0x29d   : > { %1018 = vst [vmem:[#allocation9 + $0x18] sm:$0xff] %v986_v26  ;;  %1034 = vst [vmem:[#allocation9 + $0x98] sm:$0xff] %v1002_v27  ;;  %v773_v25 = vld [vmem:[#allocation9 + $0xf8] sm:$0xff] }
 0x29f   : > { %v914_v32 = vpop.f32.mrb[4].mxu0  ;;  %v954_v33 = vpop.f32.mrb[4].mxu1 }
 0x2a0   : > { %v987_v36 = vadd.f32 %v914_v32, %v746_v28  ;;  %v1003_v37 = vadd.f32 %v954_v33, %v762_v29  ;;  %v916_v38 = vpop.f32.mrb[5].mxu0  ;;  %v956_v39 = vpop.f32.mrb[5].mxu1 }
 0x2a1   : > { %v988_v42 = vadd.f32 %v916_v38, %v747_v30  ;;  %v1004_v43 = vadd.f32 %v956_v39, %v763_v31  ;;  %v918_v44 = vpop.f32.mrb[6].mxu0  ;;  %v958_v45 = vpop.f32.mrb[6].mxu1 }
 0x2a2   : > { %1019 = vst [vmem:[#allocation9 + $0x20] sm:$0xff] %v987_v36  ;;  %1035 = vst [vmem:[#allocation9 + $0xa0] sm:$0xff] %v1003_v37  ;;  %v989_v46 = vadd.f32 %v918_v44, %v748_v34  ;;  %v1005_v47 = vadd.f32 %v958_v45, %v764_v35  ;;  %v920_v48 = vpop.f32.mrb[7].mxu0  ;;  %v960_v49 = vpop.f32.mrb[7].mxu1 }
 0x2a3   : > { %1020 = vst [vmem:[#allocation9 + $0x28] sm:$0xff] %v988_v42  ;;  %1036 = vst [vmem:[#allocation9 + $0xa8] sm:$0xff] %v1004_v43  ;;  %v990_v50 = vadd.f32 %v920_v48, %v749_v40  ;;  %v1006_v51 = vadd.f32 %v960_v49, %v765_v41 }
 0x2a4   : > { %1021 = vst [vmem:[#allocation9 + $0x30] sm:$0xff] %v989_v46  ;;  %1037 = vst [vmem:[#allocation9 + $0xb0] sm:$0xff] %v1005_v47 }
 0x2a5   : > { %1022 = vst [vmem:[#allocation9 + $0x38] sm:$0xff] %v990_v50  ;;  %1038 = vst [vmem:[#allocation9 + $0xb8] sm:$0xff] %v1006_v51 }
 0x2a7   : > { %v924_v56 = vpop.f32.mrb[8].mxu0  ;;  %v964_v57 = vpop.f32.mrb[8].mxu1 }
 0x2a8   : > { %v991_v60 = vadd.f32 %v924_v56, %v750_v52  ;;  %v1007_v61 = vadd.f32 %v964_v57, %v766_v53  ;;  %v926_v62 = vpop.f32.mrb[9].mxu0  ;;  %v966_v63 = vpop.f32.mrb[9].mxu1 }
 0x2a9   : > { %v992_v2 = vadd.f32 %v926_v62, %v751_v54  ;;  %v1008_v3 = vadd.f32 %v966_v63, %v767_v55  ;;  %v928_v4 = vpop.f32.mrb[10].mxu0  ;;  %v968_v5 = vpop.f32.mrb[10].mxu1 }
 0x2aa   : > { %1023 = vst [vmem:[#allocation9 + $0x40] sm:$0xff] %v991_v60  ;;  %1039 = vst [vmem:[#allocation9 + $0xc0] sm:$0xff] %v1007_v61  ;;  %v993_v6 = vadd.f32 %v928_v4, %v752_v58  ;;  %v1009_v7 = vadd.f32 %v968_v5, %v768_v59  ;;  %v930_v8 = vpop.f32.mrb[11].mxu0  ;;  %v970_v9 = vpop.f32.mrb[11].mxu1 }
 0x2ab   : > { %1024 = vst [vmem:[#allocation9 + $0x48] sm:$0xff] %v992_v2  ;;  %1040 = vst [vmem:[#allocation9 + $0xc8] sm:$0xff] %v1008_v3  ;;  %v994_v10 = vadd.f32 %v930_v8, %v753_v0  ;;  %v1010_v11 = vadd.f32 %v970_v9, %v769_v1 }
 0x2ac   : > { %1025 = vst [vmem:[#allocation9 + $0x50] sm:$0xff] %v993_v6  ;;  %1041 = vst [vmem:[#allocation9 + $0xd0] sm:$0xff] %v1009_v7 }
 0x2ad   : > { %1026 = vst [vmem:[#allocation9 + $0x58] sm:$0xff] %v994_v10  ;;  %1042 = vst [vmem:[#allocation9 + $0xd8] sm:$0xff] %v1010_v11 }
 0x2af   : > { %v934_v16 = vpop.f32.mrb[12].mxu0  ;;  %v974_v17 = vpop.f32.mrb[12].mxu1 }
 0x2b0   : > { %v995_v20 = vadd.f32 %v934_v16, %v754_v12  ;;  %v1011_v21 = vadd.f32 %v974_v17, %v770_v13  ;;  %v936_v22 = vpop.f32.mrb[13].mxu0  ;;  %v976_v23 = vpop.f32.mrb[13].mxu1 }
 0x2b1   : > { %v996_v26 = vadd.f32 %v936_v22, %v755_v14  ;;  %v1012_v27 = vadd.f32 %v976_v23, %v771_v15  ;;  %v938_v28 = vpop.f32.mrb[14].mxu0  ;;  %v978_v29 = vpop.f32.mrb[14].mxu1 }
 0x2b2   : > { %1027 = vst [vmem:[#allocation9 + $0x60] sm:$0xff] %v995_v20  ;;  %1043 = vst [vmem:[#allocation9 + $0xe0] sm:$0xff] %v1011_v21  ;;  %v997_v30 = vadd.f32 %v938_v28, %v756_v18  ;;  %v1013_v31 = vadd.f32 %v978_v29, %v772_v19  ;;  %v940_v32 = vpop.f32.mrb[15].mxu0  ;;  %v980_v33 = vpop.f32.mrb[15].mxu1 }
 0x2b3   : > { %1028 = vst [vmem:[#allocation9 + $0x68] sm:$0xff] %v996_v26  ;;  %1044 = vst [vmem:[#allocation9 + $0xe8] sm:$0xff] %v1012_v27  ;;  %v998_v34 = vadd.f32 %v940_v32, %v757_v24  ;;  %v1014_v35 = vadd.f32 %v980_v33, %v773_v25 }
 0x2b4   : > { %1029 = vst [vmem:[#allocation9 + $0x70] sm:$0xff] %v997_v30  ;;  %1045 = vst [vmem:[#allocation9 + $0xf0] sm:$0xff] %v1013_v31 }
 0x2b5   : > { %1030 = vst [vmem:[#allocation9 + $0x78] sm:$0xff] %v998_v34  ;;  %1046 = vst [vmem:[#allocation9 + $0xf8] sm:$0xff] %v1014_v35 }
 0x2b6 PF: > { %s1885_s12 = sadd.s32 4294967295, %s1555_s16   ;;  %s1565_s22 = smov [#allocation9]  }
 0x2b7   : > { %p1819_p12 = scmp.eq.s32.totalorder %s1885_s12, 3  ;;  %s1057_s30 = sshll.u32 %s1565_s22, 4  ;;  %s1058_s30 = int_to_ptr.vmem [resolvable:$true] %s1057_s30 }
 0x2b8   : > { %s1455_s3 = scalar_lea.vmem %s1058_s30, 4096  ;;  %p1462_p13 = scmp.lt.s32.totalorder %s1058_s30, %s1058_s30 }
 0x2b9   : > { %p1456_p0 = scmp.ne.s32.totalorder %s1058_s30, %s1455_s3  ;;  %p1463_p2 = scmp.lt.s32.totalorder %s1455_s3, %s1455_s3 }
 0x2bb   : > { %p1457_p3 = pnand %p1456_p0, %p1819_p12  ;;  %p1464_p1 = por %p1463_p2, %p1462_p13 }
 0x2bd   : > { %p1458_p6 = pneg %p1457_p3 }
 0x2bf   : > { %p1465_p11 = pnand %p1464_p1, %p1458_p6 }
 0x2c1   : > { %1468 = shalt.err (!%p1465_p11)
}
 0x2c2   : > { %s1469_s7 = scalar_lea.hbm %s1871_s2, 4096 }
 0x2c3   : > { %p1470_p4 = scmp.ne.s32.totalorder %s1871_s2, %s1469_s7  ;;  %p1475_p9 = scmp.lt.u32.totalorder %s1469_s7, %s1871_s2 }
 0x2c5   : > { %p1471_p5 = pnand %p1470_p4, %p1819_p12 }
 0x2c7   : > { %p1472_p8 = pneg %p1471_p5 }
 0x2c9   : > { %p1477_p7 = pnand %p1475_p9, %p1472_p8 }
 0x2cb   : > { %1480 = shalt.err (!%p1477_p7)
}
 0x2cc   : > { %s1566_s29 = smov 256   ;;  %s1567_s20 = smov 16  }
 0x2cd   : > { %1251 = dma.vmem_to_hbm [thread:$0]  (%p1819_p12), %s1058_s30, 4096, %s1871_s2, [#allocation6], %s1566_s29, %s1566_s29, %s1567_s20  }
 0x2ce   : > { %1522 = dma.done.wait (%p1819_p12), [#allocation6], 4096  }
 0x2cf   : > { %1524 = vsyncadd (%p1819_p12), [#allocation6], 4294963200 }
 0x2d0 PF: > { %s17_s16 = sadd.s32 1, %s1555_s16   ;;  %s1887_s4 = smov %s1900_s9 }
 0x2d1   : > { %p14_p10 = scmp.ge.s32.totalorder %s17_s16, 6   ;;  %s1888_s9 = smov %s1531_s10 }
 0x2d2   : > { %s1889_s10 = smov %s1535_s11  ;;  %s1890_s11 = smov %s1697_s25 }
 0x2d3   : > { %s1891_s12 = smov %s1547_s14  ;;  %s1892_s13 = smov %s1551_s15 }
 0x2d4   : > { %s1893_s14 = smov %s1896_s8  ;;  %s1894_s15 = smov %s1887_s4 }
 0x2d5   :  { %16 = sbr.rel (!%p14_p10) target bundleno = 7 (0x7), region = 90 }
 0x2dc   :  { %1073 = vsyncpa [#allocation5], 1 }
 0x2dd   :  { %1075 = vsyncpa [#allocation5 + $0x1], 1 }
 0x2de   :  { %1076 = vsyncpa [#allocation8], 1 }
 0x2df   :  { %1078 = vsyncpa [#allocation8 + $0x1], 1 }
 0x2e0   :  { %1079 = vsyncpa [#allocation6], 1 }
 0x2e1   :  { %1081 = vsyncpa [#allocation6 + $0x1], 1 }

</bundles_post_ra>
